<compile_context>
chip_gen: v7x
topology: tpu7x:2x2x1
jax: 0.10.0
libtpu: 0.0.40
codegen_flags: <defaults>
</compile_context>

<pallas_src>
import jax
import jax.numpy as jnp
from jax.experimental import pallas as pl
from jax.experimental.pallas import tpu as pltpu


def attention_self_kernel(x_ref, w1_ref, b1_ref, w2_ref, attn_ref, cv_ref):
    TB, S, D = x_ref.shape
    H = w1_ref.shape[1]

    x = x_ref[...]                                            # (TB, S, D)

    # ff1 + relu: one (TB*S, D) @ (D, H) MXU matmul, f32 accumulation.
    h = jnp.dot(x.reshape(TB * S, D), w1_ref[...],
                preferred_element_type=jnp.float32) + b1_ref[...]
    h = jnp.maximum(h, 0.0)                                   # (TB*S, H), f32

    # ff2 (no bias) as a VPU multiply + cross-lane reduce over H.
    # w2_ref is a (1, H) row and broadcasts over (TB, S, H).
    s = jnp.sum(h.reshape(TB, S, H) * w2_ref[...], axis=-1)   # (TB, S) lane-major

    # Softmax over the sequence axis (== dim=1 in PyTorch), fully in f32.
    m = jnp.max(s, axis=-1, keepdims=True)
    e = jnp.exp(s - m)
    l = jnp.sum(e, axis=-1, keepdims=True)                    # (TB, 1)
    a = e * pl.reciprocal(l, approx=False)                    # EUP recip + VPU mul

    # Lane-dense-as-possible attention store (S on the lane axis, no transpose).
    attn_ref[...] = a.astype(attn_ref.dtype)

    # Context vector on the MXU: cv[b, :] = sum_s a[b, s] * x[b, s, :].
    # Batched (TB,1,S)@(TB,S,D) contraction, f32 accumulation; no (TB,S,D)
    # f32 broadcast temporary and no extra copy of x.
    cv = jnp.einsum("bqs,bsd->bqd", a.astype(x.dtype)[:, None, :], x,
                    preferred_element_type=jnp.float32)       # (TB, 1, D)
    cv_ref[...] = cv.reshape(TB, D).astype(cv_ref.dtype)


def _vmem_capacity_bytes():
    """Physical VMEM of the running chip; conservative fallback = 64 MiB (v7x)."""
    try:
        return int(pltpu.get_tpu_info().vmem_capacity_bytes)
    except Exception:  # interpret mode / older jax — assume the smallest VMEM
        return 64 << 20


def _choose_tiling(B, S, D, H, x_itemsize, out_itemsize, w_itemsize):
    """Pick the batch tile TB and a matching vmem_limit_bytes.

    Accounts for every per-step VMEM consumer and targets >=4 grid steps when
    the problem is big enough (pipelining + v7x dual-TensorCore sharding),
    while keeping per-buffer x blocks large enough to amortize the ~0.35 us
    per-step overhead.
    """
    cap = _vmem_capacity_bytes()
    # ~62% of physical VMEM as the per-step working-set budget
    # (~80 MiB on 128-MiB v5e/v6e, ~40 MiB on 64-MiB v7x).
    budget = (cap * 5) // 8

    def step_bytes(tb):
        x_blk = tb * S * D * x_itemsize                       # one x buffer
        h_tmp = tb * S * H * 4                                # ff1 output (f32)
        sm_tmp = 4 * tb * S * 4                               # scores/exp/attn temps
        attn_blk = tb * S * out_itemsize
        cv_blk = tb * D * out_itemsize
        wts = (D * H + 2 * H) * w_itemsize                    # w1 + b1 + w2
        # x and both outputs are double-buffered by the pipeline; weight blocks
        # are also allocated twice by default (index_map is constant, so no
        # re-DMA, but the buffers exist).
        return 2 * x_blk + h_tmp + sm_tmp + 2 * (attn_blk + cv_blk) + 2 * wts

    # Legal batch tiles: divide B, and are 8-aligned unless they cover the full
    # batch — the output blocks (tb, S) / (tb, D) put tb on the sublane axis,
    # so tb must be a multiple of 8 or equal to the full array extent.
    candidates = [tb for tb in range(B, 0, -1)
                  if B % tb == 0 and (tb == B or tb % 8 == 0)]
    feasible = [tb for tb in candidates if step_bytes(tb) <= budget]
    if not feasible:
        feasible = [candidates[-1]]                           # smallest legal tile

    # Prefer >=4 grid steps (full DMA/compute overlap; batch axis shards across
    # both TensorCores on v7x), then >=2 — but only while the x block stays
    # >= ~1 MiB so the per-step overhead does not dominate.
    min_block_bytes = 1 << 20
    tb = feasible[0]                                          # largest feasible tile
    for target_steps in (4, 2):
        opts = [t for t in feasible
                if B // t >= target_steps and t * S * D * x_itemsize >= min_block_bytes]
        if opts:
            tb = opts[0]
            break

    need = step_bytes(tb)
    vmem_limit = int(min((cap * 3) // 4, max(32 << 20, 2 * need + (8 << 20))))
    return tb, vmem_limit


def attention_self(x, w1, b1, w2, *, block_b=None, out_dtype=None):
    """x: (B, S, D); w1: (D, H); b1: (H,); w2: (H,).  Returns (attn (B,S), cv (B,D))."""
    B, S, D = x.shape
    H = w1.shape[1]
    out_dtype = x.dtype if out_dtype is None else jnp.dtype(out_dtype)

    b1_2d = b1.reshape(1, H)
    w2_row = w2.reshape(1, H)                                 # row layout for VPU reduce

    tb, vmem_limit = _choose_tiling(B, S, D, H, x.dtype.itemsize,
                                    jnp.dtype(out_dtype).itemsize,
                                    w1.dtype.itemsize)
    if block_b is not None:
        tb = block_b
    assert B % tb == 0 and (tb == B or tb % 8 == 0), "invalid batch tile"
    grid = (B // tb,)

    out_shapes = (
        jax.ShapeDtypeStruct((B, S), out_dtype),              # attention weights
        jax.ShapeDtypeStruct((B, D), out_dtype),              # context vector
    )

    return pl.pallas_call(
        attention_self_kernel,
        out_shape=out_shapes,
        grid_spec=pltpu.PrefetchScalarGridSpec(
            num_scalar_prefetch=0,
            grid=grid,
            in_specs=[
                pl.BlockSpec((tb, S, D), lambda i: (i, 0, 0)),   # x, TB batches/step
                pl.BlockSpec((D, H), lambda i: (0, 0)),          # w1 (resident)
                pl.BlockSpec((1, H), lambda i: (0, 0)),          # b1 row
                pl.BlockSpec((1, H), lambda i: (0, 0)),          # w2 row
            ],
            out_specs=[
                pl.BlockSpec((tb, S), lambda i: (i, 0)),         # attn (S on lanes)
                pl.BlockSpec((tb, D), lambda i: (i, 0)),         # cv   (D on lanes)
            ],
        ),
        compiler_params=pltpu.CompilerParams(
            dimension_semantics=("parallel",),                # batch shards across TCs
            vmem_limit_bytes=vmem_limit,
        ),
    )(x, w1, b1_2d, w2_row)


def attention_self_ref(x, w1, b1, w2):
    """Pure-JAX reference mirroring the PyTorch forward (mask=None path)."""
    h = jax.nn.relu(jnp.einsum("bsd,dh->bsh", x, w1) + b1)      # (B,S,H)
    scores = jnp.einsum("bsh,h->bs", h, w2)                     # (B,S)
    attn = jax.nn.softmax(scores, axis=1)                       # (B,S)
    cv = jnp.einsum("bs,bsd->bd", attn, x)                      # (B,D)
    return attn, cv


if __name__ == "__main__":
    # Small shapes consistent with the module: batch=2, seq=8, input_size=32, hidden=16
    B, S, D, H = 2, 8, 32, 16

    key = jax.random.PRNGKey(0)
    kx, kw1, kb1, kw2 = jax.random.split(key, 4)

    x = jax.random.normal(kx, (B, S, D), dtype=jnp.float32)
    # Deterministic parameter init (PyTorch-Linear-style uniform bounds)
    bound1 = 1.0 / (D ** 0.5)
    bound2 = 1.0 / (H ** 0.5)
    w1 = jax.random.uniform(kw1, (D, H), minval=-bound1, maxval=bound1, dtype=jnp.float32)
    b1 = jax.random.uniform(kb1, (H,), minval=-bound1, maxval=bound1, dtype=jnp.float32)
    w2 = jax.random.uniform(kw2, (H,), minval=-bound2, maxval=bound2, dtype=jnp.float32)

    attn, cv = attention_self(x, w1, b1, w2)
    attn = jax.block_until_ready(attn)
    cv = jax.block_until_ready(cv)

    attn_ref, cv_ref = attention_self_ref(x, w1, b1, w2)
    assert attn.shape == (B, S) and cv.shape == (B, D)
    assert jnp.allclose(attn, attn_ref, atol=1e-5, rtol=1e-5), "attn mismatch"
    assert jnp.allclose(cv, cv_ref, atol=1e-5, rtol=1e-5), "cv mismatch"

    print("KERNEL_OK")
</pallas_src>

<mosaic_0001>
module attributes {stable_mosaic.version = 11 : i64} {
  func.func @attention_self_kernel(%arg0: i32, %arg1: memref<2x8x32xf32, #tpu.memory_space<vmem>>, %arg2: memref<32x16xf32, #tpu.memory_space<vmem>>, %arg3: memref<1x16xf32, #tpu.memory_space<vmem>>, %arg4: memref<1x16xf32, #tpu.memory_space<vmem>>, %arg5: memref<2x8xf32, #tpu.memory_space<vmem>>, %arg6: memref<2x32xf32, #tpu.memory_space<vmem>>) attributes {dimension_semantics = [#tpu.dimension_semantics<parallel>], iteration_bounds = array<i64: 1>, scalar_prefetch = 0 : i64, scratch_operands = 0 : i64, tpu.core_type = #tpu.core_type<tc>, window_params = [{transform_indices = @transform_0, window_bounds = array<i64: 2, 8, 32>}, {pipeline_mode = #tpu.pipeline_mode<synchronous>, transform_indices = @transform_1, window_bounds = array<i64: 32, 16>}, {pipeline_mode = #tpu.pipeline_mode<synchronous>, transform_indices = @transform_2, window_bounds = array<i64: 1, 16>}, {pipeline_mode = #tpu.pipeline_mode<synchronous>, transform_indices = @transform_3, window_bounds = array<i64: 1, 16>}, {transform_indices = @transform_4, window_bounds = array<i64: 2, 8>}, {transform_indices = @transform_5, window_bounds = array<i64: 2, 32>}]} {
    %c0 = arith.constant 0 : index
    %c0_0 = arith.constant 0 : index
    %c0_1 = arith.constant 0 : index
    %0 = vector.load %arg1[%c0, %c0_0, %c0_1] : memref<2x8x32xf32, #tpu.memory_space<vmem>>, vector<2x8x32xf32>
    %1 = vector.shape_cast %0 : vector<2x8x32xf32> to vector<16x32xf32>
    %c0_2 = arith.constant 0 : index
    %c0_3 = arith.constant 0 : index
    %2 = vector.load %arg2[%c0_2, %c0_3] : memref<32x16xf32, #tpu.memory_space<vmem>>, vector<32x16xf32>
    %cst = arith.constant dense<0.000000e+00> : vector<16x16xf32>
    %3 = tpu.matmul %1, %2, %cst {dimension_numbers = #tpu.dot_dimension_numbers<[1], [0], [0], [1], [0, 0, 1, 1], [], []>} : vector<16x32xf32>, vector<32x16xf32>, vector<16x16xf32> -> vector<16x16xf32>
    %c0_4 = arith.constant 0 : index
    %c0_5 = arith.constant 0 : index
    %4 = vector.load %arg3[%c0_4, %c0_5] : memref<1x16xf32, #tpu.memory_space<vmem>>, vector<1x16xf32>
    %5 = vector.broadcast %4 : vector<1x16xf32> to vector<16x16xf32>
    %6 = arith.addf %3, %5 : vector<16x16xf32>
    %cst_6 = arith.constant 0.000000e+00 : f32
    %7 = vector.broadcast %cst_6 : f32 to vector<16x16xf32>
    %8 = arith.maximumf %6, %7 : vector<16x16xf32>
    %9 = vector.shape_cast %8 : vector<16x16xf32> to vector<2x8x16xf32>
    %c0_7 = arith.constant 0 : index
    %c0_8 = arith.constant 0 : index
    %10 = vector.load %arg4[%c0_7, %c0_8] : memref<1x16xf32, #tpu.memory_space<vmem>>, vector<1x16xf32>
    %11 = vector.shape_cast %10 : vector<1x16xf32> to vector<1x1x16xf32>
    %12 = vector.broadcast %11 : vector<1x1x16xf32> to vector<2x8x16xf32>
    %13 = arith.mulf %9, %12 : vector<2x8x16xf32>
    %cst_9 = arith.constant dense<0.000000e+00> : vector<2x8xf32>
    %14 = vector.multi_reduction <add>, %13, %cst_9 [2] : vector<2x8x16xf32> to vector<2x8xf32>
    %cst_10 = arith.constant dense<0xFF800000> : vector<2xf32>
    %15 = vector.multi_reduction <maximumf>, %14, %cst_10 [1] : vector<2x8xf32> to vector<2xf32>
    %16 = vector.shape_cast %15 : vector<2xf32> to vector<2x1xf32>
    %17 = vector.broadcast %16 : vector<2x1xf32> to vector<2x8xf32>
    %18 = arith.subf %14, %17 : vector<2x8xf32>
    %19 = math.exp %18 : vector<2x8xf32>
    %cst_11 = arith.constant dense<0.000000e+00> : vector<2xf32>
    %20 = vector.multi_reduction <add>, %19, %cst_11 [1] : vector<2x8xf32> to vector<2xf32>
    %21 = vector.shape_cast %20 : vector<2xf32> to vector<2x1xf32>
    %22 = tpu.reciprocal %21 : vector<2x1xf32> -> vector<2x1xf32>
    %23 = vector.broadcast %22 : vector<2x1xf32> to vector<2x8xf32>
    %24 = arith.mulf %19, %23 : vector<2x8xf32>
    %c0_12 = arith.constant 0 : index
    %c0_13 = arith.constant 0 : index
    %25 = vector.load %arg5[%c0_12, %c0_13] : memref<2x8xf32, #tpu.memory_space<vmem>>, vector<2x8xf32>
    tpu.vector_store %arg5[%c0_12, %c0_13], %24 {strides = array<i32>} : memref<2x8xf32, #tpu.memory_space<vmem>>, vector<2x8xf32>,
    %26 = vector.shape_cast %24 : vector<2x8xf32> to vector<2x1x8xf32>
    "tpu.trace_start"() <{level = 10 : i32, message = "bqs,bsd->bqd"}> : () -> ()
    %cst_14 = arith.constant dense<0.000000e+00> : vector<2x1x32xf32>
    %27 = tpu.matmul %26, %0, %cst_14 {dimension_numbers = #tpu.dot_dimension_numbers<[2], [1], [1], [2], [0, 0, 0, 1, 1, 2], [0], [0]>} : vector<2x1x8xf32>, vector<2x8x32xf32>, vector<2x1x32xf32> -> vector<2x1x32xf32>
    "tpu.trace_stop"() : () -> ()
    %28 = vector.shape_cast %27 : vector<2x1x32xf32> to vector<2x32xf32>
    %c0_15 = arith.constant 0 : index
    %c0_16 = arith.constant 0 : index
    %29 = vector.load %arg6[%c0_15, %c0_16] : memref<2x32xf32, #tpu.memory_space<vmem>>, vector<2x32xf32>
    tpu.vector_store %arg6[%c0_15, %c0_16], %28 {strides = array<i32>} : memref<2x32xf32, #tpu.memory_space<vmem>>, vector<2x32xf32>,
    return
  }
  func.func @transform_0(%arg0: i32) -> (i32, i32, i32) {
    %c0_i32 = arith.constant 0 : i32
    %c0_i32_0 = arith.constant 0 : i32
    %c0_i32_1 = arith.constant 0 : i32
    return %arg0, %c0_i32, %c0_i32_0 : i32, i32, i32
  }
  func.func @transform_1(%arg0: i32) -> (i32, i32) {
    %c0_i32 = arith.constant 0 : i32
    %c0_i32_0 = arith.constant 0 : i32
    %c0_i32_1 = arith.constant 0 : i32
    return %c0_i32, %c0_i32_0 : i32, i32
  }
  func.func @transform_2(%arg0: i32) -> (i32, i32) {
    %c0_i32 = arith.constant 0 : i32
    %c0_i32_0 = arith.constant 0 : i32
    %c0_i32_1 = arith.constant 0 : i32
    return %c0_i32, %c0_i32_0 : i32, i32
  }
  func.func @transform_3(%arg0: i32) -> (i32, i32) {
    %c0_i32 = arith.constant 0 : i32
    %c0_i32_0 = arith.constant 0 : i32
    %c0_i32_1 = arith.constant 0 : i32
    return %c0_i32, %c0_i32_0 : i32, i32
  }
  func.func @transform_4(%arg0: i32) -> (i32, i32) {
    %c0_i32 = arith.constant 0 : i32
    %c0_i32_0 = arith.constant 0 : i32
    return %arg0, %c0_i32 : i32, i32
  }
  func.func @transform_5(%arg0: i32) -> (i32, i32) {
    %c0_i32 = arith.constant 0 : i32
    %c0_i32_0 = arith.constant 0 : i32
    return %arg0, %c0_i32 : i32, i32
  }
}

</mosaic_0001>

<bundles_post_ra>
// kernel: tpu_custom_call.1
= control target key start
LH: loop header
LB: loop body
LE: loop exit
PB: predicated region body
PF: predicated region fallthrough
CT: control target
= control target key end

     0   :  { %11 = vsyncpa [#allocation3], 0  ;;  %vm34_vm0 = vcmask 261120   ;;  %s608_s0 = inlined_call_operand.vmem [shape: f32[2,8,32], index: 0, kind: input, shape index: {}]   ;;  %s609_s1 = inlined_call_operand.vmem [shape: f32[32,16], index: 1, kind: input, shape index: {}]   ;;  %s610_s2 = inlined_call_operand.vmem [shape: f32[1,16], index: 2, kind: input, shape index: {}]   ;;  %s611_s3 = inlined_call_operand.vmem [shape: f32[1,16], index: 3, kind: input, shape index: {}]   ;;  %s612_s4 = inlined_call_operand.hbm [shape: f32[2,8], index: 4, kind: output, shape index: {0}]   ;;  %s613_s5 = inlined_call_operand.hbm [shape: f32[2,32], index: 5, kind: output, shape index: {1}]  }
   0x1   :  { %v23_v0 = vld [vmem:[%s609_s1] sm:$0xff]  ;;  %v24_v1 = vld [vmem:[%s609_s1 + $0x8] sm:$0xff]  ;;  %v25_v2 = vld [vmem:[%s609_s1 + $0x10] sm:$0xff] }
   0x2   :  { %v441_v3 = vpack.c.bf16 %v24_v1, %v23_v0  ;;  %v26_v4 = vld [vmem:[%s609_s1 + $0x18] sm:$0xff]  ;;  %v560_v5 = vld [vmem:[%s608_s0] sm:$0xff] }
   0x3   :  { %v445_v6 = vpack.c.bf16 %v26_v4, %v25_v2  ;;  %428 = vmatprep.mubr.msk.f32.mxu0 %vm34_vm0, %v560_v5 }
   0x4   :  { %12 = vsyncpa [#allocation5], 0  ;;  %442 = vmatprep.subr.bf16.mxu0 %v441_v3  ;;  %v566_v7 = vld [vmem:[%s608_s0 + $0x8] sm:$0xff]  ;;  %v404_v8 = vld [vmem:[%s610_s2] ss:$0 sm:$0xff]  ;;  %vm127_vm1 = vcmask 130048   ;;  %v136_v20 = vlaneseq }
   0x5   :  { %444 = vmatpush3.bf16.msra.mxu0 %v441_v3  ;;  %v407_v13 = vld [vmem:[%s611_s3] ss:$0 sm:$0xff]  ;;  %vm146_vm2 = vcmask 1041409   ;;  %vm149_vm3 = vcmask 58368   ;;  %v510_v30 = vmov 0   ;;  %v511_v48 = vmov 0.0  }
   0x6   :  { %446 = vmatprep.subr.bf16.mxu0 %v445_v6  ;;  %v137_v21 = vand.u32 127, %v136_v20  ;;  %v139_v22 = vshrl.u32 %v136_v20, 7  ;;  %455 = vset.pattern.permute.xlu0 %v510_v30  ;;  %vm512_vm4 = vmmov 0   ;;  %vm224_vm5 = vcmask 64512   ;;  %s513_s0 = smov [#allocation2]  }
   0x7   :  { %454 = vset.pattern.permute.xlu1 %v510_v30  ;;  %431 = vmatprep.subr.mxu1 %v511_v48  ;;  %s382_s2 = sshll.u32 %s513_s0, 4  ;;  %s383_s2 = int_to_ptr.vmem [resolvable:$true] %s382_s2 }
   0x8   :  { %v140_v24 = vsub.s32 %v137_v21, %v139_v22  ;;  %v156_v31 = vsub.s32 0, %v139_v22  ;;  %v160_v32 = vsub.s32 1, %v139_v22  ;;  %432 = vmatpush3.msra.mxu1 %v560_v5  ;;  %433 = vmatprep.mubr.msk.f32.mxu1 %vm512_vm4, %v511_v48  ;;  %s462_s3 = scalar_lea.vmem %s383_s2, 32  ;;  %p467_p1 = scmp.lt.s32.totalorder %s383_s2, %s383_s2 }
   0x9   :  { %448 = vmatpush3.bf16.msra.mxu0 %v445_v6  ;;  %436 = vmatprep.subr.mxu1 %v511_v48  ;;  %p463_p0 = scmp.ne.s32.totalorder %s383_s2, %s462_s3  ;;  %p468_p2 = scmp.lt.s32.totalorder %s462_s3, %s462_s3 }
   0xb   :  { %p469_p3 = por %p468_p2, %p467_p1 }
   0xc   :  { %429 = vmatmul.mubr.msk.f32.vlgmr.msra.gmra.mrb[0].mxu0 %vm34_vm0, %v566_v7 }
   0xd   :  { %p470_p4 = pnand %p469_p3, %p463_p0 }
  0xdf   :  { %v430_v9 = vpop.f32.mrb[0].mxu0 }
  0xe0   :  { %v113_v10 = vadd.f32 %v430_v9, %v404_v8  ;;  %v107_v11 = vpop.f32.mrb[1].mxu0 }
  0xe1   :  { %v108_v12 = vadd.f32 %v404_v8, %v107_v11 }
  0xe2   :  { %v117_v14 = vmax.f32 %v113_v10, 0.0 }
  0xe3   :  { %v116_v15 = vmax.f32 %v108_v12, 0.0 }
  0xe4   :  { %v126_v18 = vmul.f32 %v407_v13, %v117_v14 }
  0xe5   :  { %v125_v16 = vmul.f32 %v407_v13, %v116_v15 }
  0xe6   :  { %v131_v19 = vsel %vm127_vm1, %v126_v18, 0.0 }
  0xe7   :  { %v128_v17 = vsel %vm127_vm1, %v125_v16, 0.0 }
  0xe8   :  { %129 = vadd.xlane.f32.xlu0 %v128_v17 }
  0xec   :  { %132 = vadd.xlane.f32.xlu0 %v131_v19 }
 0x175   :  { %v130_v23 = vpop.xlane.xlu0 %129 }
 0x176   :  { %v141_v26 = vrot.slane %v130_v23, %v140_v24 }
 0x179   :  { %v133_v25 = vpop.xlane.xlu0 %132 }
 0x17a   :  { %v145_v27 = vrot.slane %v133_v25, %v140_v24 }
 0x17c   :  { %v147_v28 = vsel %vm146_vm2, %v145_v27, %v141_v26 }
 0x17d   :  { %v150_v29 = vsel %vm149_vm3, %v147_v28, -inf }
 0x17e   :  { %151 = vmax.xlane.f32.xlu1 %v150_v29 }
 0x20b   :  { %v152_v33 = vpop.xlane.xlu1 %151 }
 0x20c   :  { %v157_v34 = vrot.slane %v152_v33, %v156_v31  ;;  %v161_v35 = vrot.slane %v152_v33, %v160_v32 }
 0x20e   :  { %v164_v36 = vsub.f32 %v130_v23, %v157_v34  ;;  %v165_v37 = vsub.f32 %v133_v25, %v161_v35 }
 0x210   :  { %v166_v38 = vmul.f32 1.442695, %v164_v36  ;;  %v168_v39 = vmul.f32 1.442695, %v165_v37 }
 0x212   :  { %456 = vpow2.f32 %v166_v38 }
 0x213   :  { %458 = vpow2.f32 %v168_v39 }
 0x21c   :  { %v457_v40 = vpop.eup %456 }
 0x21d   :  { %v459_v41 = vpop.eup %458  ;;  %173 = vperm.xlu1 %454, %v457_v40  }
 0x21e   :  { %176 = vperm.xlu0 %455, %v459_v41  }
 0x29c   :  { %v174_v42 = vpop.permute.xlu1 %173 }
 0x29d   :  { %v177_v43 = vpop.permute.xlu0 %176  ;;  %v181_v44 = vrot.slane %v174_v42, %v140_v24 }
 0x29e   :  { %v185_v45 = vrot.slane %v177_v43, %v140_v24 }
 0x2a0   :  { %v186_v46 = vsel %vm146_vm2, %v185_v45, %v181_v44 }
 0x2a1   :  { %v188_v47 = vsel %vm149_vm3, %v186_v46, 0.0 }
 0x2a2   :  { %189 = vadd.xlane.f32.xlu1 %v188_v47 }
 0x32f   :  { %v190_v49 = vpop.xlane.xlu1 %189 }
 0x330   :  { %460 = vrcp.f32 %v190_v49 }
 0x33a   :  { %v461_v50 = vpop.eup %460 }
 0x33b   :  { %v196_v51 = vrot.slane %v461_v50, %v156_v31  ;;  %v200_v53 = vrot.slane %v461_v50, %v160_v32 }
 0x33d   :  { %v203_v52 = vmul.f32 %v457_v40, %v196_v51  ;;  %v204_v54 = vmul.f32 %v459_v41, %v200_v53 }
 0x33f   :  { %208 = vperm.xlu0 %455, %v203_v52  }
 0x343   :  { %211 = vperm.xlu0 %455, %v204_v54  }
 0x3be   :  { %v209_v55 = vpop.permute.xlu0 %208 }
 0x3bf   :  { %v216_v56 = vrot.slane %v209_v55, %v140_v24 }
 0x3c1   :  { %434 = vmatmul.mubr.msk.f32.vlgmr.msra.gmra.mrb[0].mxu1 %vm224_vm5, %v216_v56 }
 0x3c2   :  { %437 = vmatpush3.msra.mxu1 %v566_v7  ;;  %v212_v57 = vpop.permute.xlu0 %211  ;;  %438 = vmatprep.mubr.msk.f32.mxu1 %vm512_vm4, %v511_v48 }
 0x3c3   :  { %v220_v58 = vrot.slane %v212_v57, %v140_v24 }
 0x3c5   :  { %439 = vmatmul.mubr.msk.f32.vlgmr.msra.gmra.mrb[2].mxu1 %vm224_vm5, %v220_v58  ;;  %v221_v59 = vsel %vm146_vm2, %v220_v58, %v216_v56 }
 0x3c6   :  { %223 = vst.msk [vmem:[#allocation2] sm:$0x3] %vm149_vm3, %v221_v59 }
 0x3c7   :  { %473 = shalt.err (!%p470_p4)
}
 0x3c8   :  { %s474_s10 = scalar_lea.hbm %s612_s4, 32 }
 0x3c9   :  { %p475_p5 = scmp.ne.s32.totalorder %s612_s4, %s474_s10  ;;  %p478_p6 = scmp.lt.u32.totalorder %s474_s10, %s612_s4 }
 0x3cb   :  { %p480_p7 = pnand %p478_p6, %p475_p5 }
 0x3cd   :  { %483 = shalt.err (!%p480_p7)
}
 0x3ce   :  { %385 = dma.vmem_to_hbm [thread:$0]  %s383_s2, 32, %s612_s4, [#allocation3]   ;;  %vm374_vm6 = vcmask 254976  }
 0x3cf   :  { %s514_s17 = smov [#allocation4]  }
 0x3d0   :  { %s392_s18 = sshll.u32 %s514_s17, 4  ;;  %s393_s18 = int_to_ptr.vmem [resolvable:$true] %s392_s18 }
 0x3d1   :  { %s484_s19 = scalar_lea.vmem %s393_s18, 32  ;;  %p489_p9 = scmp.lt.s32.totalorder %s393_s18, %s393_s18 }
 0x3d2   :  { %p485_p8 = scmp.ne.s32.totalorder %s393_s18, %s484_s19  ;;  %p490_p10 = scmp.lt.s32.totalorder %s484_s19, %s484_s19 }
 0x3d4   :  { %p491_p11 = por %p490_p10, %p489_p9 }
 0x3d6   :  { %p492_p12 = pnand %p491_p11, %p485_p8 }
 0x494   :  { %v293_v60 = vpop.f32.mrb[0].mxu1 }
 0x495   :  { %v435_v61 = vpop.f32.mrb[1].mxu1 }
 0x498   :  { %v365_v62 = vpop.f32.mrb[2].mxu1 }
 0x499   :  { %v371_v63 = vrot.slane %v365_v62, 7  ;;  %v440_v0 = vpop.f32.mrb[3].mxu1 }
 0x49b   :  { %v372_v1 = vsel %vm146_vm2, %v371_v63, %v293_v60 }
 0x49c   :  { %375 = vst.msk [vmem:[#allocation4] sm:$0x3] %vm374_vm6, %v372_v1 }
 0x49d   :  { %495 = shalt.err (!%p492_p12)
}
 0x49e   :  { %s496_s21 = scalar_lea.hbm %s613_s5, 32 }
 0x49f   :  { %p497_p13 = scmp.ne.s32.totalorder %s613_s5, %s496_s21  ;;  %p500_p0 = scmp.lt.u32.totalorder %s496_s21, %s613_s5 }
 0x4a1   :  { %p502_p1 = pnand %p500_p0, %p497_p13 }
 0x4a3   :  { %505 = shalt.err (!%p502_p1)
}
 0x4a4   :  { %395 = dma.vmem_to_hbm [thread:$0]  %s393_s18, 32, %s613_s5, [#allocation5]  }
 0x4a5   :  { %506 = dma.done.wait [#allocation3], 32  }
 0x4a6   :  { %507 = vsyncadd [#allocation3], 4294967264 }
 0x4a7   :  { %508 = dma.done.wait [#allocation5], 32  }
 0x4a8   :  { %509 = vsyncadd [#allocation5], 4294967264 }
 0x4a9   :  { %402 = vsyncpa [#allocation3], 1 }
 0x4aa   :  { %403 = vsyncpa [#allocation5], 1 }

</bundles_post_ra>
